<compile_context>
chip_gen: v7x
topology: tpu7x:2x2x1
jax: 0.10.0
libtpu: 0.0.40
codegen_flags: <defaults>
</compile_context>

<pallas_src>
import jax
import jax.numpy as jnp
from jax.experimental import pallas as pl
from jax.experimental.pallas import tpu as pltpu

# ---- model hyper-parameters (consistent with the module) --------------------
B = 2          # batch
N = 8          # sequence length
D = 32         # dim
HEADS = 4      # heads
DH = 16        # dim_head
INNER = HEADS * DH          # inner_dim = 64
BN = B * N                  # batch folded into M
SCALE = DH ** (-0.5)
EPS = 1e-5                  # nn.LayerNorm default eps
NEG = -1e30                 # large finite negative (avoid inf-inf -> NaN)


def attention_kernel(x_ref, gamma_ref, beta_ref, wqkv_ref, wo_ref, bo_ref,
                     mask_ref, o_ref):
    # x: (BN, D), everything stays 2-D inside the kernel.
    x = x_ref[...]

    # ---- LayerNorm over last dim (biased variance, like torch) ----
    mean = jnp.mean(x, axis=-1, keepdims=True)
    cent = x - mean
    var = jnp.mean(cent * cent, axis=-1, keepdims=True)
    xn = cent * jax.lax.rsqrt(var + EPS)
    xn = xn * gamma_ref[...] + beta_ref[...]                 # (BN, D)

    # ---- fused q/k/v projection: one (BN,D)@(D,3*INNER) matmul ----
    # (attention scale is pre-folded into the q columns in prepare_params)
    qkv = jnp.dot(xn, wqkv_ref[...], preferred_element_type=jnp.float32)

    # block-diagonal mask: 0 on intra-batch NxN blocks, NEG elsewhere.
    mask = mask_ref[...]                                     # (BN, BN)

    acc = jnp.zeros((BN, D), jnp.float32)
    for h in range(HEADS):
        q = qkv[:, h * DH:(h + 1) * DH]                          # (BN, DH)
        k = qkv[:, INNER + h * DH:INNER + (h + 1) * DH]          # (BN, DH)
        v = qkv[:, 2 * INNER + h * DH:2 * INNER + (h + 1) * DH]  # (BN, DH)

        # scores without materializing K^T: contract q dim 1 vs k dim 1.
        dots = jax.lax.dot_general(q, k, (((1,), (1,)), ((), ())),
                                   preferred_element_type=jnp.float32)
        dots = dots + mask                                   # before row-max
        m = jnp.max(dots, axis=-1, keepdims=True)
        p = jnp.exp(dots - m)
        attn = p * pl.reciprocal(jnp.sum(p, axis=-1, keepdims=True),
                                 approx=True)
        out_h = jnp.dot(attn, v, preferred_element_type=jnp.float32)

        # per-head output-projection accumulation (no lane-axis concat).
        acc = acc + jnp.dot(out_h, wo_ref[h],
                            preferred_element_type=jnp.float32)

    # dropout(p=0.0) is identity (inference semantics).
    o_ref[...] = acc + bo_ref[...]


def prepare_params(gamma, beta, w_qkv, w_out, b_out):
    """One-time parameter transform:
    - attention scale folded into the q columns of the fused qkv weight,
    - output-projection weight in head-major (HEADS, DH, D) layout,
    - LayerNorm/bias vectors reshaped to (1, D),
    - block-diagonal cross-batch mask precomputed."""
    col_scale = jnp.concatenate(
        [jnp.full((INNER,), SCALE, jnp.float32),
         jnp.ones((2 * INNER,), jnp.float32)])
    w_fused = (w_qkv * col_scale).astype(jnp.float32)        # (D, 3*INNER)
    wo = w_out.reshape(HEADS, DH, D)                         # (H, DH, D)
    bid = jnp.repeat(jnp.arange(B), N)                       # (BN,)
    mask = jnp.where(bid[:, None] == bid[None, :], 0.0, NEG).astype(
        jnp.float32)                                         # (BN, BN)
    return (gamma.reshape(1, D), beta.reshape(1, D), w_fused, wo,
            b_out.reshape(1, D), mask)


@jax.jit
def attention_forward(x, gamma2, beta2, wqkv, wo, bo2, mask):
    # flatten batch at the pallas_call boundary (free metadata reshape).
    x2d = x.reshape(BN, D)
    y2d = pl.pallas_call(
        attention_kernel,
        out_shape=jax.ShapeDtypeStruct((BN, D), jnp.float32),
        grid_spec=pltpu.PrefetchScalarGridSpec(
            num_scalar_prefetch=0,
            grid=(1,),
            in_specs=[
                pl.BlockSpec((BN, D), lambda i: (0, 0)),              # x
                pl.BlockSpec((1, D), lambda i: (0, 0)),               # gamma
                pl.BlockSpec((1, D), lambda i: (0, 0)),               # beta
                pl.BlockSpec((D, 3 * INNER), lambda i: (0, 0)),       # W_qkv
                pl.BlockSpec((HEADS, DH, D), lambda i: (0, 0, 0)),    # W_out
                pl.BlockSpec((1, D), lambda i: (0, 0)),               # b_out
                pl.BlockSpec((BN, BN), lambda i: (0, 0)),             # mask
            ],
            out_specs=pl.BlockSpec((BN, D), lambda i: (0, 0)),
        ),
        compiler_params=pltpu.CompilerParams(
            dimension_semantics=("arbitrary",)),
    )(x2d, gamma2, beta2, wqkv, wo, bo2, mask)
    return y2d.reshape(B, N, D)


if __name__ == "__main__":
    key = jax.random.PRNGKey(0)
    kx, kq, ko, kb = jax.random.split(key, 4)

    # deterministic synthetic parameters (shapes per module __init__)
    x = jax.random.normal(kx, (B, N, D), dtype=jnp.float32)
    gamma = jnp.ones((D,), dtype=jnp.float32)            # LayerNorm weight
    beta = jnp.zeros((D,), dtype=jnp.float32)            # LayerNorm bias
    # to_qkv: Linear(dim, inner*3, bias=False), stored (in, out): x @ W.
    w_qkv = jax.random.normal(kq, (D, 3 * INNER), dtype=jnp.float32) * 0.05
    # to_out[0]: Linear(inner_dim, dim) with bias, stored (in, out).
    w_out = jax.random.normal(ko, (INNER, D), dtype=jnp.float32) * 0.05
    b_out = jax.random.normal(kb, (D,), dtype=jnp.float32) * 0.05

    params = prepare_params(gamma, beta, w_qkv, w_out, b_out)
    y = attention_forward(x, *params)
    jax.block_until_ready(y)

    # pure-JAX reference of the same math (original, untransformed weights)
    def ref(x):
        mean = jnp.mean(x, axis=-1, keepdims=True)
        var = jnp.mean((x - mean) ** 2, axis=-1, keepdims=True)
        xn = (x - mean) / jnp.sqrt(var + EPS) * gamma + beta
        qkv = xn @ w_qkv
        q, k, v = jnp.split(qkv, 3, axis=-1)
        rs = lambda t: t.reshape(B, N, HEADS, DH).transpose(0, 2, 1, 3)
        q, k, v = rs(q), rs(k), rs(v)
        dots = jnp.einsum("bhnd,bhmd->bhnm", q, k) * SCALE
        attn = jax.nn.softmax(dots, axis=-1)
        o = jnp.einsum("bhnm,bhmd->bhnd", attn, v)
        o = o.transpose(0, 2, 1, 3).reshape(B, N, INNER)
        return o @ w_out + b_out

    # tolerance loosened slightly for pl.reciprocal(approx=True)
    r = ref(x)
    err = float(jnp.max(jnp.abs(y - r)))
    assert jnp.allclose(y, r, atol=1e-3, rtol=1e-3), err
    print("KERNEL_OK")
</pallas_src>

<mosaic_0001>
module attributes {stable_mosaic.version = 11 : i64} {
  func.func @attention_kernel(%arg0: i32, %arg1: memref<16x32xf32, #tpu.memory_space<vmem>>, %arg2: memref<1x32xf32, #tpu.memory_space<vmem>>, %arg3: memref<1x32xf32, #tpu.memory_space<vmem>>, %arg4: memref<32x192xf32, #tpu.memory_space<vmem>>, %arg5: memref<4x16x32xf32, #tpu.memory_space<vmem>>, %arg6: memref<1x32xf32, #tpu.memory_space<vmem>>, %arg7: memref<16x16xf32, #tpu.memory_space<vmem>>, %arg8: memref<16x32xf32, #tpu.memory_space<vmem>>) attributes {dimension_semantics = [#tpu.dimension_semantics<arbitrary>], iteration_bounds = array<i64: 1>, scalar_prefetch = 0 : i64, scratch_operands = 0 : i64, tpu.core_type = #tpu.core_type<tc>, window_params = [{pipeline_mode = #tpu.pipeline_mode<synchronous>, transform_indices = @transform_0, window_bounds = array<i64: 16, 32>}, {pipeline_mode = #tpu.pipeline_mode<synchronous>, transform_indices = @transform_1, window_bounds = array<i64: 1, 32>}, {pipeline_mode = #tpu.pipeline_mode<synchronous>, transform_indices = @transform_2, window_bounds = array<i64: 1, 32>}, {pipeline_mode = #tpu.pipeline_mode<synchronous>, transform_indices = @transform_3, window_bounds = array<i64: 32, 192>}, {pipeline_mode = #tpu.pipeline_mode<synchronous>, transform_indices = @transform_4, window_bounds = array<i64: 4, 16, 32>}, {pipeline_mode = #tpu.pipeline_mode<synchronous>, transform_indices = @transform_5, window_bounds = array<i64: 1, 32>}, {pipeline_mode = #tpu.pipeline_mode<synchronous>, transform_indices = @transform_6, window_bounds = array<i64: 16, 16>}, {pipeline_mode = #tpu.pipeline_mode<synchronous>, transform_indices = @transform_7, window_bounds = array<i64: 16, 32>}]} {
    %c0 = arith.constant 0 : index
    %c0_0 = arith.constant 0 : index
    %0 = vector.load %arg1[%c0, %c0_0] : memref<16x32xf32, #tpu.memory_space<vmem>>, vector<16x32xf32>
    %cst = arith.constant dense<0.000000e+00> : vector<16xf32>
    %1 = vector.multi_reduction <add>, %0, %cst [1] : vector<16x32xf32> to vector<16xf32>
    %2 = vector.shape_cast %1 : vector<16xf32> to vector<16x1xf32>
    %cst_1 = arith.constant 3.200000e+01 : f32
    %3 = vector.broadcast %cst_1 : f32 to vector<16x1xf32>
    %4 = arith.divf %2, %3 : vector<16x1xf32>
    %5 = vector.broadcast %4 : vector<16x1xf32> to vector<16x32xf32>
    %6 = arith.subf %0, %5 : vector<16x32xf32>
    %7 = arith.mulf %6, %6 : vector<16x32xf32>
    %cst_2 = arith.constant dense<0.000000e+00> : vector<16xf32>
    %8 = vector.multi_reduction <add>, %7, %cst_2 [1] : vector<16x32xf32> to vector<16xf32>
    %9 = vector.shape_cast %8 : vector<16xf32> to vector<16x1xf32>
    %cst_3 = arith.constant 3.200000e+01 : f32
    %10 = vector.broadcast %cst_3 : f32 to vector<16x1xf32>
    %11 = arith.divf %9, %10 : vector<16x1xf32>
    %cst_4 = arith.constant 9.99999974E-6 : f32
    %12 = vector.broadcast %cst_4 : f32 to vector<16x1xf32>
    %13 = arith.addf %11, %12 : vector<16x1xf32>
    %14 = math.rsqrt %13 : vector<16x1xf32>
    %15 = vector.broadcast %14 : vector<16x1xf32> to vector<16x32xf32>
    %16 = arith.mulf %6, %15 : vector<16x32xf32>
    %c0_5 = arith.constant 0 : index
    %c0_6 = arith.constant 0 : index
    %17 = vector.load %arg2[%c0_5, %c0_6] : memref<1x32xf32, #tpu.memory_space<vmem>>, vector<1x32xf32>
    %18 = vector.broadcast %17 : vector<1x32xf32> to vector<16x32xf32>
    %19 = arith.mulf %16, %18 : vector<16x32xf32>
    %c0_7 = arith.constant 0 : index
    %c0_8 = arith.constant 0 : index
    %20 = vector.load %arg3[%c0_7, %c0_8] : memref<1x32xf32, #tpu.memory_space<vmem>>, vector<1x32xf32>
    %21 = vector.broadcast %20 : vector<1x32xf32> to vector<16x32xf32>
    %22 = arith.addf %19, %21 : vector<16x32xf32>
    %c0_9 = arith.constant 0 : index
    %c0_10 = arith.constant 0 : index
    %23 = vector.load %arg4[%c0_9, %c0_10] : memref<32x192xf32, #tpu.memory_space<vmem>>, vector<32x192xf32>
    %cst_11 = arith.constant dense<0.000000e+00> : vector<16x192xf32>
    %24 = tpu.matmul %22, %23, %cst_11 {dimension_numbers = #tpu.dot_dimension_numbers<[1], [0], [0], [1], [0, 0, 1, 1], [], []>} : vector<16x32xf32>, vector<32x192xf32>, vector<16x192xf32> -> vector<16x192xf32>
    %c0_12 = arith.constant 0 : index
    %c0_13 = arith.constant 0 : index
    %25 = vector.load %arg7[%c0_12, %c0_13] : memref<16x16xf32, #tpu.memory_space<vmem>>, vector<16x16xf32>
    %cst_14 = arith.constant 0.000000e+00 : f32
    %26 = vector.broadcast %cst_14 : f32 to vector<16x32xf32>
    %27 = vector.extract_strided_slice %24 {offsets = [0, 0], sizes = [16, 16], strides = [1, 1]} : vector<16x192xf32> to vector<16x16xf32>
    %28 = vector.extract_strided_slice %24 {offsets = [0, 64], sizes = [16, 16], strides = [1, 1]} : vector<16x192xf32> to vector<16x16xf32>
    %29 = vector.extract_strided_slice %24 {offsets = [0, 128], sizes = [16, 16], strides = [1, 1]} : vector<16x192xf32> to vector<16x16xf32>
    %cst_15 = arith.constant dense<0.000000e+00> : vector<16x16xf32>
    %30 = tpu.matmul %27, %28, %cst_15 {dimension_numbers = #tpu.dot_dimension_numbers<[1], [1], [0], [0], [0, 0, 1, 0], [], []>} : vector<16x16xf32>, vector<16x16xf32>, vector<16x16xf32> -> vector<16x16xf32>
    %31 = arith.addf %30, %25 : vector<16x16xf32>
    %cst_16 = arith.constant dense<0xFF800000> : vector<16xf32>
    %32 = vector.multi_reduction <maximumf>, %31, %cst_16 [1] : vector<16x16xf32> to vector<16xf32>
    %33 = vector.shape_cast %32 : vector<16xf32> to vector<16x1xf32>
    %34 = vector.broadcast %33 : vector<16x1xf32> to vector<16x16xf32>
    %35 = arith.subf %31, %34 : vector<16x16xf32>
    %36 = math.exp %35 : vector<16x16xf32>
    %cst_17 = arith.constant dense<0.000000e+00> : vector<16xf32>
    %37 = vector.multi_reduction <add>, %36, %cst_17 [1] : vector<16x16xf32> to vector<16xf32>
    %38 = vector.shape_cast %37 : vector<16xf32> to vector<16x1xf32>
    %39 = tpu.reciprocal %38 {approx = true} : vector<16x1xf32> -> vector<16x1xf32>
    %40 = vector.broadcast %39 : vector<16x1xf32> to vector<16x16xf32>
    %41 = arith.mulf %36, %40 : vector<16x16xf32>
    %cst_18 = arith.constant dense<0.000000e+00> : vector<16x16xf32>
    %42 = tpu.matmul %41, %29, %cst_18 {dimension_numbers = #tpu.dot_dimension_numbers<[1], [0], [0], [1], [0, 0, 1, 1], [], []>} : vector<16x16xf32>, vector<16x16xf32>, vector<16x16xf32> -> vector<16x16xf32>
    %c0_19 = arith.constant 0 : index
    %c0_20 = arith.constant 0 : index
    %c0_21 = arith.constant 0 : index
    %43 = vector.load %arg5[%c0_19, %c0_20, %c0_21] : memref<4x16x32xf32, #tpu.memory_space<vmem>>, vector<1x16x32xf32>
    %44 = vector.shape_cast %43 : vector<1x16x32xf32> to vector<16x32xf32>
    %cst_22 = arith.constant dense<0.000000e+00> : vector<16x32xf32>
    %45 = tpu.matmul %42, %44, %cst_22 {dimension_numbers = #tpu.dot_dimension_numbers<[1], [0], [0], [1], [0, 0, 1, 1], [], []>} : vector<16x16xf32>, vector<16x32xf32>, vector<16x32xf32> -> vector<16x32xf32>
    %46 = arith.addf %26, %45 : vector<16x32xf32>
    %47 = vector.extract_strided_slice %24 {offsets = [0, 16], sizes = [16, 16], strides = [1, 1]} : vector<16x192xf32> to vector<16x16xf32>
    %48 = vector.extract_strided_slice %24 {offsets = [0, 80], sizes = [16, 16], strides = [1, 1]} : vector<16x192xf32> to vector<16x16xf32>
    %49 = vector.extract_strided_slice %24 {offsets = [0, 144], sizes = [16, 16], strides = [1, 1]} : vector<16x192xf32> to vector<16x16xf32>
    %cst_23 = arith.constant dense<0.000000e+00> : vector<16x16xf32>
    %50 = tpu.matmul %47, %48, %cst_23 {dimension_numbers = #tpu.dot_dimension_numbers<[1], [1], [0], [0], [0, 0, 1, 0], [], []>} : vector<16x16xf32>, vector<16x16xf32>, vector<16x16xf32> -> vector<16x16xf32>
    %51 = arith.addf %50, %25 : vector<16x16xf32>
    %cst_24 = arith.constant dense<0xFF800000> : vector<16xf32>
    %52 = vector.multi_reduction <maximumf>, %51, %cst_24 [1] : vector<16x16xf32> to vector<16xf32>
    %53 = vector.shape_cast %52 : vector<16xf32> to vector<16x1xf32>
    %54 = vector.broadcast %53 : vector<16x1xf32> to vector<16x16xf32>
    %55 = arith.subf %51, %54 : vector<16x16xf32>
    %56 = math.exp %55 : vector<16x16xf32>
    %cst_25 = arith.constant dense<0.000000e+00> : vector<16xf32>
    %57 = vector.multi_reduction <add>, %56, %cst_25 [1] : vector<16x16xf32> to vector<16xf32>
    %58 = vector.shape_cast %57 : vector<16xf32> to vector<16x1xf32>
    %59 = tpu.reciprocal %58 {approx = true} : vector<16x1xf32> -> vector<16x1xf32>
    %60 = vector.broadcast %59 : vector<16x1xf32> to vector<16x16xf32>
    %61 = arith.mulf %56, %60 : vector<16x16xf32>
    %cst_26 = arith.constant dense<0.000000e+00> : vector<16x16xf32>
    %62 = tpu.matmul %61, %49, %cst_26 {dimension_numbers = #tpu.dot_dimension_numbers<[1], [0], [0], [1], [0, 0, 1, 1], [], []>} : vector<16x16xf32>, vector<16x16xf32>, vector<16x16xf32> -> vector<16x16xf32>
    %c1 = arith.constant 1 : index
    %c0_27 = arith.constant 0 : index
    %c0_28 = arith.constant 0 : index
    %63 = vector.load %arg5[%c1, %c0_27, %c0_28] : memref<4x16x32xf32, #tpu.memory_space<vmem>>, vector<1x16x32xf32>
    %64 = vector.shape_cast %63 : vector<1x16x32xf32> to vector<16x32xf32>
    %cst_29 = arith.constant dense<0.000000e+00> : vector<16x32xf32>
    %65 = tpu.matmul %62, %64, %cst_29 {dimension_numbers = #tpu.dot_dimension_numbers<[1], [0], [0], [1], [0, 0, 1, 1], [], []>} : vector<16x16xf32>, vector<16x32xf32>, vector<16x32xf32> -> vector<16x32xf32>
    %66 = arith.addf %46, %65 : vector<16x32xf32>
    %67 = vector.extract_strided_slice %24 {offsets = [0, 32], sizes = [16, 16], strides = [1, 1]} : vector<16x192xf32> to vector<16x16xf32>
    %68 = vector.extract_strided_slice %24 {offsets = [0, 96], sizes = [16, 16], strides = [1, 1]} : vector<16x192xf32> to vector<16x16xf32>
    %69 = vector.extract_strided_slice %24 {offsets = [0, 160], sizes = [16, 16], strides = [1, 1]} : vector<16x192xf32> to vector<16x16xf32>
    %cst_30 = arith.constant dense<0.000000e+00> : vector<16x16xf32>
    %70 = tpu.matmul %67, %68, %cst_30 {dimension_numbers = #tpu.dot_dimension_numbers<[1], [1], [0], [0], [0, 0, 1, 0], [], []>} : vector<16x16xf32>, vector<16x16xf32>, vector<16x16xf32> -> vector<16x16xf32>
    %71 = arith.addf %70, %25 : vector<16x16xf32>
    %cst_31 = arith.constant dense<0xFF800000> : vector<16xf32>
    %72 = vector.multi_reduction <maximumf>, %71, %cst_31 [1] : vector<16x16xf32> to vector<16xf32>
    %73 = vector.shape_cast %72 : vector<16xf32> to vector<16x1xf32>
    %74 = vector.broadcast %73 : vector<16x1xf32> to vector<16x16xf32>
    %75 = arith.subf %71, %74 : vector<16x16xf32>
    %76 = math.exp %75 : vector<16x16xf32>
    %cst_32 = arith.constant dense<0.000000e+00> : vector<16xf32>
    %77 = vector.multi_reduction <add>, %76, %cst_32 [1] : vector<16x16xf32> to vector<16xf32>
    %78 = vector.shape_cast %77 : vector<16xf32> to vector<16x1xf32>
    %79 = tpu.reciprocal %78 {approx = true} : vector<16x1xf32> -> vector<16x1xf32>
    %80 = vector.broadcast %79 : vector<16x1xf32> to vector<16x16xf32>
    %81 = arith.mulf %76, %80 : vector<16x16xf32>
    %cst_33 = arith.constant dense<0.000000e+00> : vector<16x16xf32>
    %82 = tpu.matmul %81, %69, %cst_33 {dimension_numbers = #tpu.dot_dimension_numbers<[1], [0], [0], [1], [0, 0, 1, 1], [], []>} : vector<16x16xf32>, vector<16x16xf32>, vector<16x16xf32> -> vector<16x16xf32>
    %c2 = arith.constant 2 : index
    %c0_34 = arith.constant 0 : index
    %c0_35 = arith.constant 0 : index
    %83 = vector.load %arg5[%c2, %c0_34, %c0_35] : memref<4x16x32xf32, #tpu.memory_space<vmem>>, vector<1x16x32xf32>
    %84 = vector.shape_cast %83 : vector<1x16x32xf32> to vector<16x32xf32>
    %cst_36 = arith.constant dense<0.000000e+00> : vector<16x32xf32>
    %85 = tpu.matmul %82, %84, %cst_36 {dimension_numbers = #tpu.dot_dimension_numbers<[1], [0], [0], [1], [0, 0, 1, 1], [], []>} : vector<16x16xf32>, vector<16x32xf32>, vector<16x32xf32> -> vector<16x32xf32>
    %86 = arith.addf %66, %85 : vector<16x32xf32>
    %87 = vector.extract_strided_slice %24 {offsets = [0, 48], sizes = [16, 16], strides = [1, 1]} : vector<16x192xf32> to vector<16x16xf32>
    %88 = vector.extract_strided_slice %24 {offsets = [0, 112], sizes = [16, 16], strides = [1, 1]} : vector<16x192xf32> to vector<16x16xf32>
    %89 = vector.extract_strided_slice %24 {offsets = [0, 176], sizes = [16, 16], strides = [1, 1]} : vector<16x192xf32> to vector<16x16xf32>
    %cst_37 = arith.constant dense<0.000000e+00> : vector<16x16xf32>
    %90 = tpu.matmul %87, %88, %cst_37 {dimension_numbers = #tpu.dot_dimension_numbers<[1], [1], [0], [0], [0, 0, 1, 0], [], []>} : vector<16x16xf32>, vector<16x16xf32>, vector<16x16xf32> -> vector<16x16xf32>
    %91 = arith.addf %90, %25 : vector<16x16xf32>
    %cst_38 = arith.constant dense<0xFF800000> : vector<16xf32>
    %92 = vector.multi_reduction <maximumf>, %91, %cst_38 [1] : vector<16x16xf32> to vector<16xf32>
    %93 = vector.shape_cast %92 : vector<16xf32> to vector<16x1xf32>
    %94 = vector.broadcast %93 : vector<16x1xf32> to vector<16x16xf32>
    %95 = arith.subf %91, %94 : vector<16x16xf32>
    %96 = math.exp %95 : vector<16x16xf32>
    %cst_39 = arith.constant dense<0.000000e+00> : vector<16xf32>
    %97 = vector.multi_reduction <add>, %96, %cst_39 [1] : vector<16x16xf32> to vector<16xf32>
    %98 = vector.shape_cast %97 : vector<16xf32> to vector<16x1xf32>
    %99 = tpu.reciprocal %98 {approx = true} : vector<16x1xf32> -> vector<16x1xf32>
    %100 = vector.broadcast %99 : vector<16x1xf32> to vector<16x16xf32>
    %101 = arith.mulf %96, %100 : vector<16x16xf32>
    %cst_40 = arith.constant dense<0.000000e+00> : vector<16x16xf32>
    %102 = tpu.matmul %101, %89, %cst_40 {dimension_numbers = #tpu.dot_dimension_numbers<[1], [0], [0], [1], [0, 0, 1, 1], [], []>} : vector<16x16xf32>, vector<16x16xf32>, vector<16x16xf32> -> vector<16x16xf32>
    %c3 = arith.constant 3 : index
    %c0_41 = arith.constant 0 : index
    %c0_42 = arith.constant 0 : index
    %103 = vector.load %arg5[%c3, %c0_41, %c0_42] : memref<4x16x32xf32, #tpu.memory_space<vmem>>, vector<1x16x32xf32>
    %104 = vector.shape_cast %103 : vector<1x16x32xf32> to vector<16x32xf32>
    %cst_43 = arith.constant dense<0.000000e+00> : vector<16x32xf32>
    %105 = tpu.matmul %102, %104, %cst_43 {dimension_numbers = #tpu.dot_dimension_numbers<[1], [0], [0], [1], [0, 0, 1, 1], [], []>} : vector<16x16xf32>, vector<16x32xf32>, vector<16x32xf32> -> vector<16x32xf32>
    %106 = arith.addf %86, %105 : vector<16x32xf32>
    %c0_44 = arith.constant 0 : index
    %c0_45 = arith.constant 0 : index
    %107 = vector.load %arg6[%c0_44, %c0_45] : memref<1x32xf32, #tpu.memory_space<vmem>>, vector<1x32xf32>
    %108 = vector.broadcast %107 : vector<1x32xf32> to vector<16x32xf32>
    %109 = arith.addf %106, %108 : vector<16x32xf32>
    %c0_46 = arith.constant 0 : index
    %c0_47 = arith.constant 0 : index
    %110 = vector.load %arg8[%c0_46, %c0_47] : memref<16x32xf32, #tpu.memory_space<vmem>>, vector<16x32xf32>
    tpu.vector_store %arg8[%c0_46, %c0_47], %109 {strides = array<i32>} : memref<16x32xf32, #tpu.memory_space<vmem>>, vector<16x32xf32>,
    return
  }
  func.func @transform_0(%arg0: i32) -> (i32, i32) {
    %c0_i32 = arith.constant 0 : i32
    %c0_i32_0 = arith.constant 0 : i32
    %c0_i32_1 = arith.constant 0 : i32
    return %c0_i32, %c0_i32_0 : i32, i32
  }
  func.func @transform_1(%arg0: i32) -> (i32, i32) {
    %c0_i32 = arith.constant 0 : i32
    %c0_i32_0 = arith.constant 0 : i32
    %c0_i32_1 = arith.constant 0 : i32
    return %c0_i32, %c0_i32_0 : i32, i32
  }
  func.func @transform_2(%arg0: i32) -> (i32, i32) {
    %c0_i32 = arith.constant 0 : i32
    %c0_i32_0 = arith.constant 0 : i32
    %c0_i32_1 = arith.constant 0 : i32
    return %c0_i32, %c0_i32_0 : i32, i32
  }
  func.func @transform_3(%arg0: i32) -> (i32, i32) {
    %c0_i32 = arith.constant 0 : i32
    %c0_i32_0 = arith.constant 0 : i32
    %c0_i32_1 = arith.constant 0 : i32
    return %c0_i32, %c0_i32_0 : i32, i32
  }
  func.func @transform_4(%arg0: i32) -> (i32, i32, i32) {
    %c0_i32 = arith.constant 0 : i32
    %c0_i32_0 = arith.constant 0 : i32
    %c0_i32_1 = arith.constant 0 : i32
    %c0_i32_2 = arith.constant 0 : i32
    return %c0_i32, %c0_i32_0, %c0_i32_1 : i32, i32, i32
  }
  func.func @transform_5(%arg0: i32) -> (i32, i32) {
    %c0_i32 = arith.constant 0 : i32
    %c0_i32_0 = arith.constant 0 : i32
    %c0_i32_1 = arith.constant 0 : i32
    return %c0_i32, %c0_i32_0 : i32, i32
  }
  func.func @transform_6(%arg0: i32) -> (i32, i32) {
    %c0_i32 = arith.constant 0 : i32
    %c0_i32_0 = arith.constant 0 : i32
    %c0_i32_1 = arith.constant 0 : i32
    return %c0_i32, %c0_i32_0 : i32, i32
  }
  func.func @transform_7(%arg0: i32) -> (i32, i32) {
    %c0_i32 = arith.constant 0 : i32
    %c0_i32_0 = arith.constant 0 : i32
    %c0_i32_1 = arith.constant 0 : i32
    return %c0_i32, %c0_i32_0 : i32, i32
  }
}

</mosaic_0001>

<bundles_post_ra>
// kernel: attention_forward.1
= control target key start
LH: loop header
LB: loop body
LE: loop exit
PB: predicated region body
PF: predicated region fallthrough
CT: control target
= control target key end

     0   :  { %12 = vsyncpa [#allocation3], 0  ;;  %s2042_s0 = inlined_call_operand.hbm [shape: f32[16,32], index: 0, kind: input, shape index: {}]   ;;  %s2043_s1 = inlined_call_operand.vmem [shape: f32[1,32], index: 1, kind: input, shape index: {}]   ;;  %s2044_s2 = inlined_call_operand.vmem [shape: f32[1,32], index: 2, kind: input, shape index: {}]   ;;  %s2045_s3 = inlined_call_operand.hbm [shape: f32[32,192], index: 3, kind: input, shape index: {}]   ;;  %s2046_s4 = inlined_call_operand.hbm [shape: f32[4,16,32], index: 4, kind: input, shape index: {}]   ;;  %s2047_s5 = inlined_call_operand.vmem [shape: f32[1,32], index: 5, kind: input, shape index: {}]   ;;  %s2048_s6 = inlined_call_operand.vmem [shape: f32[16,16], index: 6, kind: input, shape index: {}]   ;;  %s2049_s7 = inlined_call_operand.hbm [shape: f32[16,32], index: 7, kind: output, shape index: {}]  }
   0x1   :  { %13 = vsyncpa [#allocation6], 0 }
   0x2   :  { %14 = vsyncpa [#allocation4], 0  ;;  %s1791_s24 = smov [#allocation5]   ;;  %s1697_s28 = scalar_lea.hbm %s2045_s3, 1024 }
   0x3   :  { %s36_s25 = sshll.u32 %s1791_s24, 4  ;;  %p1698_p0 = scmp.ne.s32.totalorder %s2045_s3, %s1697_s28  ;;  %s37_s25 = int_to_ptr.vmem [resolvable:$true] %s36_s25 }
   0x4   :  { %p1701_p1 = scmp.lt.u32.totalorder %s1697_s28, %s2045_s3 }
   0x6   :  { %p1703_p2 = pnand %p1701_p1, %p1698_p0 }
   0x8   :  { %1706 = shalt.err (!%p1703_p2)
}
   0x9   :  { %s1707_s10 = scalar_lea.vmem %s37_s25, 1024  ;;  %p1712_p4 = scmp.lt.s32.totalorder %s37_s25, %s37_s25 }
   0xa   :  { %p1708_p3 = scmp.ne.s32.totalorder %s37_s25, %s1707_s10  ;;  %p1713_p5 = scmp.lt.s32.totalorder %s1707_s10, %s1707_s10 }
   0xc   :  { %p1714_p6 = por %p1713_p5, %p1712_p4 }
   0xe   :  { %p1715_p7 = pnand %p1714_p6, %p1708_p3 }
  0x10   :  { %1718 = shalt.err (!%p1715_p7)
}
  0x11   :  { %s1792_s11 = smov 256   ;;  %s1793_s12 = smov 16  }
  0x12   :  { %42 = dma.hbm_to_vmem [thread:$0]  %s2045_s3, 1024, %s37_s25, [#allocation6], %s1792_s11, %s1792_s11, %s1793_s12  }
  0x13   :  { %s1794_s15 = smov [#allocation2]   ;;  %s1719_s19 = scalar_lea.hbm %s2042_s0, 256 }
  0x14   :  { %s20_s16 = sshll.u32 %s1794_s15, 4  ;;  %p1720_p8 = scmp.ne.s32.totalorder %s2042_s0, %s1719_s19  ;;  %s21_s16 = int_to_ptr.vmem [resolvable:$true] %s20_s16 }
  0x15   :  { %p1723_p9 = scmp.lt.u32.totalorder %s1719_s19, %s2042_s0 }
  0x17   :  { %p1725_p10 = pnand %p1723_p9, %p1720_p8 }
  0x19   :  { %1728 = shalt.err (!%p1725_p10)
}
  0x1a   :  { %s1729_s24 = scalar_lea.vmem %s21_s16, 256  ;;  %p1734_p12 = scmp.lt.s32.totalorder %s21_s16, %s21_s16 }
  0x1b   :  { %p1730_p11 = scmp.ne.s32.totalorder %s21_s16, %s1729_s24  ;;  %p1735_p13 = scmp.lt.s32.totalorder %s1729_s24, %s1729_s24 }
  0x1d   :  { %p1736_p0 = por %p1735_p13, %p1734_p12 }
  0x1f   :  { %p1737_p1 = pnand %p1736_p0, %p1730_p11 }
  0x21   :  { %1740 = shalt.err (!%p1737_p1)
}
  0x22   :  { %s1795_s3 = smov 128   ;;  %s1796_s25 = smov 8  }
  0x23   :  { %26 = dma.hbm_to_vmem [thread:$0]  %s2042_s0, 256, %s21_s16, [#allocation3], %s1795_s3, %s1795_s3, %s1796_s25  }
  0x24   :  { %s1797_s28 = smov [#allocation7]   ;;  %s1741_s9 = scalar_lea.hbm %s2046_s4, 1024 }
  0x25   :  { %s48_s29 = sshll.u32 %s1797_s28, 4  ;;  %p1742_p2 = scmp.ne.s32.totalorder %s2046_s4, %s1741_s9  ;;  %s49_s29 = int_to_ptr.vmem [resolvable:$true] %s48_s29 }
  0x26   :  { %p1745_p3 = scmp.lt.u32.totalorder %s1741_s9, %s2046_s4 }
  0x28   :  { %p1747_p4 = pnand %p1745_p3, %p1742_p2 }
  0x2a   :  { %1750 = shalt.err (!%p1747_p4)
}
  0x2b   :  { %s1751_s15 = scalar_lea.vmem %s49_s29, 1024  ;;  %p1756_p6 = scmp.lt.s32.totalorder %s49_s29, %s49_s29 }
  0x2c   :  { %p1752_p5 = scmp.ne.s32.totalorder %s49_s29, %s1751_s15  ;;  %p1757_p7 = scmp.lt.s32.totalorder %s1751_s15, %s1751_s15 }
  0x2e   :  { %p1758_p8 = por %p1757_p7, %p1756_p6 }
  0x30   :  { %p1759_p9 = pnand %p1758_p8, %p1752_p5 }
  0x32   :  { %1762 = shalt.err (!%p1759_p9)
}
  0x33   :  { %54 = dma.hbm_to_vmem [thread:$0]  %s2046_s4, 1024, %s49_s29, [#allocation6], %s1795_s3, %s1795_s3, %s1796_s25  }
  0x34   :  { %1785 = dma.done.wait [#allocation3], 256  }
  0x35   :  { %1786 = vsyncadd [#allocation3], 4294967040 }
  0x36   :  { %1787 = dma.done.wait [#allocation6], 2048  }
  0x37   :  { %1788 = vsyncadd [#allocation6], 4294965248  ;;  %vm70_vm0 = vcmask 261120   ;;  %v68_v0 = vld [vmem:[#allocation2] sm:$0xff]  ;;  %v69_v1 = vld [vmem:[#allocation2 + $0x8] sm:$0xff]  ;;  %v1798_v21 = vmov 0.0  }
  0x38   :  { %v71_v2 = vsel %vm70_vm0, %v68_v0, 0.0  ;;  %v74_v3 = vsel %vm70_vm0, %v69_v1, 0.0  ;;  %v117_v14 = vld [vmem:[#allocation5 + $0x8] sm:$0xff]  ;;  %v119_v15 = vld [vmem:[#allocation5 + $0x18] sm:$0xff]  ;;  %v116_v16 = vld [vmem:[#allocation5] sm:$0xff]  ;;  %194 = vmatprep.mubr.f32.mxu0 %v1798_v21  ;;  %vm215_vm1 = vcmask 130048  }
  0x39   :  { %72 = vadd.xlane.f32.xlu0 %v71_v2  ;;  %v1541_v17 = vpack.c.bf16 %v119_v15, %v117_v14  ;;  %v118_v18 = vld [vmem:[#allocation5 + $0x10] sm:$0xff]  ;;  %v121_v19 = vld [vmem:[#allocation5 + $0x28] sm:$0xff]  ;;  %v123_v20 = vld [vmem:[#allocation5 + $0x38] sm:$0xff]  ;;  %s1801_s20 = smov 112   ;;  %s1803_s26 = smov 96  }
  0x3a   :  { %v1543_v22 = vpack.c.bf16 %v118_v18, %v116_v16  ;;  %v1545_v23 = vpack.c.bf16 %v123_v20, %v121_v19  ;;  %v120_v24 = vld [vmem:[#allocation5 + $0x20] sm:$0xff]  ;;  %v122_v25 = vld [vmem:[#allocation5 + $0x30] sm:$0xff]  ;;  %vm1921_vm2 = vmpackc.low %vm215_vm1, %vm215_vm1  ;;  %s1804_s27 = smov 80   ;;  %s1805_s29 = smov [#allocation8]  }
  0x3b   :  { %1542 = vmatprep.subr.bf16.mxu0 %v1541_v17  ;;  %v1547_v26 = vpack.c.bf16 %v122_v25, %v120_v24  ;;  %v1372_v34 = vld [vmem:[%s2043_s1] ss:$0 sm:$0xff]  ;;  %s1799_s1 = smov 48   ;;  %v1940_v61 = vld [vmem:[%s2048_s6 + $0x8] sm:$0xff]  ;;  %s1359_s30 = sshll.u32 %s1805_s29, 4  ;;  %s1360_s30 = int_to_ptr.vmem [resolvable:$true] %s1359_s30 }
  0x3c   :  { %1544 = vmatpush1.bf16.msra.mxu0 %v1543_v22  ;;  %v1373_v36 = vld [vmem:[%s2044_s2] ss:$0 sm:$0xff]  ;;  %s1800_s2 = smov 64   ;;  %s1763_s8 = scalar_lea.vmem %s1360_s30, 256 }
  0x3d   :  { %75 = vadd.xlane.f32.xlu0 %v74_v3  ;;  %1546 = vmatprep.subr.bf16.mxu0 %v1545_v23  ;;  %v1945_v62 = vld [vmem:[%s2048_s6] sm:$0xff]  ;;  %s1802_s6 = smov 32   ;;  %p1764_p10 = scmp.ne.s32.totalorder %s1360_s30, %s1763_s8 }
  0x3e   :  { %p1768_p11 = scmp.lt.s32.totalorder %s1360_s30, %s1360_s30  ;;  %p1769_p12 = scmp.lt.s32.totalorder %s1763_s8, %s1763_s8 }
  0x40   :  { %1548 = vmatpush1.bf16.msra.mxu0 %v1547_v26  ;;  %p1770_p13 = por %p1769_p12, %p1768_p11 }
  0x42   :  { %p1771_p0 = pnand %p1770_p13, %p1764_p10 }
  0xc6   :  { %v73_v4 = vpop.xlane.xlu0 %72 }
  0xc7   :  { %v78_v5 = vmul.f32 0.03125, %v73_v4 }
  0xc9   :  { %v80_v6 = vsub.f32 %v68_v0, %v78_v5 }
  0xca   :  { %v76_v7 = vpop.xlane.xlu0 %75 }
  0xcb   :  { %v79_v8 = vmul.f32 0.03125, %v76_v7  ;;  %v82_v9 = vmul.f32 %v80_v6, %v80_v6 }
  0xcd   :  { %v81_v10 = vsub.f32 %v69_v1, %v79_v8  ;;  %v84_v11 = vsel %vm70_vm0, %v82_v9, 0.0 }
  0xce   :  { %85 = vadd.xlane.f32.xlu1 %v84_v11 }
  0xcf   :  { %v83_v12 = vmul.f32 %v81_v10, %v81_v10 }
  0xd1   :  { %v87_v13 = vsel %vm70_vm0, %v83_v12, 0.0 }
  0xd2   :  { %88 = vadd.xlane.f32.xlu1 %v87_v13 }
 0x15b   :  { %v86_v27 = vpop.xlane.xlu1 %85 }
 0x15c   :  { %v90_v28 = vmul.f32 0.03125, %v86_v27 }
 0x15e   :  { %v92_v29 = vadd.f32 1e-05, %v90_v28 }
 0x15f   :  { %v89_v30 = vpop.xlane.xlu1 %88 }
 0x160   :  { %1661 = vrsqrt.f32 %v92_v29  ;;  %v91_v31 = vmul.f32 0.03125, %v89_v30 }
 0x162   :  { %v93_v32 = vadd.f32 1e-05, %v91_v31  ;;  %v402_v31 = vld [vmem:[#allocation7] sm:$0xff] }
 0x164   :  { %1663 = vrsqrt.f32 %v93_v32  ;;  %v403_v32 = vld [vmem:[#allocation7 + $0x8] sm:$0xff] }
 0x16a   :  { %v1662_v33 = vpop.eup %1661 }
 0x16b   :  { %v96_v35 = vmul.f32 %v1662_v33, %v80_v6  ;;  %v1573_v33 = vpack.c.bf16 %v403_v32, %v402_v31 }
 0x16d   :  { %v105_v37 = vmul.f32 %v1372_v34, %v96_v35 }
 0x16e   :  { %v1664_v38 = vpop.eup %1663 }
 0x16f   :  { %v114_v39 = vadd.f32 %v1373_v36, %v105_v37  ;;  %v97_v40 = vmul.f32 %v1664_v38, %v81_v10 }
 0x171   :  { %1374 = vmatmul.mubr.msk.f32.vlgmr.msra.gmra.mrb[0].mxu0 %vm70_vm0, %v114_v39  ;;  %v106_v41 = vmul.f32 %v1372_v34, %v97_v40 }
 0x172   :  { %200 = vmatprep.mubr.f32.mxu0 %v1798_v21 }
 0x173   :  { %v115_v42 = vadd.f32 %v1373_v36, %v106_v41 }
 0x175   :  { %1375 = vmatmul.mubr.msk.f32.gmra.mrb[2].mxu0 %vm70_vm0, %v115_v42  ;;  %v607_v42 = vld [vmem:[#allocation7 + $0x10] sm:$0xff] }
 0x244   :  { %v1901_v43 = vpop.f32.mrb[0].mxu0 }
 0x245   :  { %v198_v44 = vpop.f32.mrb[1].mxu0  ;;  %1461 = vmatprep.mubr.msk.f32.mxu1 %vm215_vm1, %v1901_v43 }
 0x248   :  { %v1905_v45 = vpop.f32.mrb[2].mxu0 }
 0x249   :  { %v204_v46 = vpop.f32.mrb[3].mxu0  ;;  %v1909_v47 = vpack.i.bf16 %v1905_v45, %v1901_v43 }
 0x24a   :  { %v1555_v48 = vpack.c.bf16 %v204_v46, %v198_v44  ;;  %v1911_v49 = vpack.i.bf16 %v204_v46, %v198_v44  ;;  %v608_v44 = vld [vmem:[#allocation7 + $0x18] sm:$0xff] }
 0x24b   :  { %1632 = vrot.lane.b32.xlu1 %v1909_v47, %s1799_s1  ;;  %1627 = vrot.lane.b32.xlu0 %v1909_v47, %s1800_s2 }
 0x24f   :  { %404 = vrot.lane.b32.xlu1 %v1901_v43, %s1801_s20 }
 0x253   :  { %406 = vrot.lane.b32.xlu1 %v1905_v45, %s1801_s20 }
 0x2bd   :  { %v1633_v50 = vpop.permute.xlu1 %1632  ;;  %v1628_v51 = vpop.permute.xlu0 %1627 }
 0x2be   :  { %v1635_v52 = vunpack.i.h.bf16 %v1633_v50  ;;  %v1634_v53 = vunpack.i.l.bf16 %v1633_v50  ;;  %v1630_v54 = vunpack.i.h.bf16 %v1628_v51  ;;  %v1629_v55 = vunpack.i.l.bf16 %v1628_v51 }
 0x2c0   :  { %v1559_v57 = vpack.c.bf16 %v1635_v52, %v1634_v53  ;;  %v1549_v58 = vpack.c.bf16 %v1630_v54, %v1629_v55 }
 0x2c1   :  { %v405_v59 = vpop.permute.xlu1 %404 }
 0x2c2   :  { %1551 = vmatprep.subr.msk.bf16.mxu1 %vm1921_vm2, %v1549_v58  ;;  %1561 = vmatprep.subr.msk.bf16.mxu0 %vm1921_vm2, %v1559_v57 }
 0x2c3   :  { %1475 = vmatprep.mubr.msk.f32.mxu0 %vm215_vm1, %v405_v59  ;;  %1554 = vmatpush3.bf16.xpose.msk.msra.mxu1 %vm1921_vm2, %v1549_v58 }
 0x2c4   :  { %1564 = vmatpush3.bf16.xpose.msk.msra.mxu0 %vm1921_vm2, %v1559_v57  ;;  %1556 = vmatprep.subr.bf16.mxu1 %v1555_v48 }
 0x2c5   :  { %v407_v60 = vpop.permute.xlu1 %406  ;;  %1574 = vmatprep.subr.bf16.mxu0 %v1573_v33 }
 0x2ca   :  { %1462 = vmatmul.mubr.msk.f32.vlgmr.msra.gmra.mrb[0].mxu1 %vm215_vm1, %v1905_v45 }
 0x2cb   :  { %1476 = vmatmul.mubr.msk.f32.vlgmr.msra.gmra.mrb[4].mxu0 %vm215_vm1, %v407_v60  ;;  %1558 = vmatpush3.bf16.msra.mxu1 %v1555_v48  ;;  %v1569_v48 = vpack.c.bf16 %v608_v44, %v607_v42 }
 0x2cc   :  { %1576 = vmatpush3.bf16.msra.mxu0 %v1573_v33 }
 0x39d   :  { %v1463_v63 = vpop.f32.mrb[0].mxu1 }
 0x39e   :  { %v296_v0 = vadd.f32 %v1463_v63, %v1940_v61  ;;  %v1477_v1 = vpop.f32.mrb[4].mxu0  ;;  %v290_v2 = vpop.f32.mrb[1].mxu1 }
 0x39f   :  { %v291_v3 = vadd.f32 %v290_v2, %v1945_v62  ;;  %v486_v4 = vpop.f32.mrb[5].mxu0  ;;  %v492_v8 = vadd.f32 %v1477_v1, %v1940_v61 }
 0x3a0   :  { %v302_v5 = vsel %vm215_vm1, %v296_v0, -inf  ;;  %v487_v6 = vadd.f32 %v486_v4, %v1945_v62 }
 0x3a1   :  { %303 = vmax.xlane.f32.xlu1 %v302_v5  ;;  %v299_v7 = vsel %vm215_vm1, %v291_v3, -inf  ;;  %v498_v10 = vsel %vm215_vm1, %v492_v8, -inf }
 0x3a2   :  { %300 = vmax.xlane.f32.xlu0 %v299_v7  ;;  %v495_v9 = vsel %vm215_vm1, %v487_v6, -inf }
 0x3a6   :  { %496 = vmax.xlane.f32.xlu0 %v495_v9 }
 0x3aa   :  { %499 = vmax.xlane.f32.xlu0 %v498_v10 }
 0x42e   :  { %v304_v11 = vpop.xlane.xlu1 %303 }
 0x42f   :  { %v306_v12 = vsub.f32 %v296_v0, %v304_v11  ;;  %v301_v13 = vpop.xlane.xlu0 %300 }
 0x430   :  { %v305_v14 = vsub.f32 %v291_v3, %v301_v13 }
 0x431   :  { %v309_v15 = vmul.f32 1.442695, %v306_v12 }
 0x432   :  { %v307_v16 = vmul.f32 1.442695, %v305_v14 }
 0x433   :  { %1665 = vpow2.f32 %v309_v15  ;;  %v497_v17 = vpop.xlane.xlu0 %496 }
 0x434   :  { %1667 = vpow2.f32 %v307_v16  ;;  %v501_v18 = vsub.f32 %v487_v6, %v497_v17 }
 0x436   :  { %v503_v19 = vmul.f32 1.442695, %v501_v18 }
 0x437   :  { %v500_v20 = vpop.xlane.xlu0 %499 }
 0x438   :  { %1669 = vpow2.f32 %v503_v19  ;;  %v502_v21 = vsub.f32 %v492_v8, %v500_v20 }
 0x43a   :  { %v505_v22 = vmul.f32 1.442695, %v502_v21 }
 0x43c   :  { %1671 = vpow2.f32 %v505_v22 }
 0x43d   :  { %v1666_v23 = vpop.eup %1665 }
 0x43e   :  { %v1668_v24 = vpop.eup %1667  ;;  %v314_v25 = vsel %vm215_vm1, %v1666_v23, 0.0 }
 0x43f   :  { %315 = vadd.xlane.f32.xlu1 %v314_v25  ;;  %v311_v26 = vsel %vm215_vm1, %v1668_v24, 0.0 }
 0x440   :  { %312 = vadd.xlane.f32.xlu0 %v311_v26 }
 0x442   :  { %v1670_v27 = vpop.eup %1669 }
 0x443   :  { %v507_v28 = vsel %vm215_vm1, %v1670_v27, 0.0 }
 0x444   :  { %508 = vadd.xlane.f32.xlu0 %v507_v28 }
 0x446   :  { %v1672_v29 = vpop.eup %1671 }
 0x447   :  { %v510_v30 = vsel %vm215_vm1, %v1672_v29, 0.0 }
 0x448   :  { %511 = vadd.xlane.f32.xlu1 %v510_v30 }
 0x459   :  { %1642 = vrot.lane.b32.xlu1 %v1909_v47, %s1802_s6 }
 0x45a   :  { %1637 = vrot.lane.b32.xlu0 %v1911_v49, %s1801_s20 }
 0x45d   :  { %771 = vrot.lane.b32.xlu1 %v1901_v43, %s1803_s26 }
 0x45e   :  { %1647 = vrot.lane.b32.xlu0 %v1909_v47, %s1793_s12 }
 0x461   :  { %773 = vrot.lane.b32.xlu1 %v1905_v45, %s1803_s26 }
 0x462   :  { %1059 = vrot.lane.b32.xlu0 %v1905_v45, %s1804_s27 }
 0x465   :  { %1057 = vrot.lane.b32.xlu1 %v1901_v43, %s1804_s27 }
 0x4cc   :  { %v316_v34 = vpop.xlane.xlu1 %315 }
 0x4cd   :  { %1673 = vrcp.f32 %v316_v34  ;;  %v313_v35 = vpop.xlane.xlu0 %312 }
 0x4ce   :  { %1675 = vrcp.f32 %v313_v35  ;;  %v972_v35 = vld [vmem:[#allocation7 + $0x20] sm:$0xff] }
 0x4d1   :  { %v509_v36 = vpop.xlane.xlu0 %508 }
 0x4d2   :  { %1677 = vrcp.f32 %v509_v36  ;;  %v973_v36 = vld [vmem:[#allocation7 + $0x28] sm:$0xff] }
 0x4d5   :  { %v512_v37 = vpop.xlane.xlu1 %511  ;;  %v1638_v38 = vpop.permute.xlu0 %1637 }
 0x4d6   :  { %1679 = vrcp.f32 %v512_v37  ;;  %v1640_v39 = vunpack.i.h.bf16 %v1638_v38  ;;  %v1639_v40 = vunpack.i.l.bf16 %v1638_v38  ;;  %v1587_v37 = vpack.c.bf16 %v973_v36, %v972_v35 }
 0x4d7   :  { %v1674_v41 = vpop.eup %1673 }
 0x4d8   :  { %v1676_v43 = vpop.eup %1675  ;;  %v1565_v45 = vpack.c.bf16 %v1640_v39, %v1639_v40  ;;  %v320_v47 = vmul.f32 %v1674_v41, %v1666_v23 }
 0x4d9   :  { %v319_v46 = vmul.f32 %v1676_v43, %v1668_v24  ;;  %v1643_v51 = vpop.permute.xlu1 %1642  ;;  %v1648_v63 = vpop.permute.xlu0 %1647 }
 0x4da   :  { %1566 = vmatprep.subr.bf16.mxu1 %v1565_v45  ;;  %v1645_v53 = vunpack.i.h.bf16 %v1643_v51  ;;  %v1644_v54 = vunpack.i.l.bf16 %v1643_v51  ;;  %v1650_v0 = vunpack.i.h.bf16 %v1648_v63  ;;  %v1649_v1 = vunpack.i.l.bf16 %v1648_v63  ;;  %v1259_v63 = vld [vmem:[#allocation7 + $0x38] sm:$0xff] }
 0x4db   :  { %1468 = vmatprep.mubr.msk.f32.mxu1 %vm215_vm1, %v319_v46 }
 0x4dc   :  { %v1678_v50 = vpop.eup %1677  ;;  %1469 = vmatmul.mubr.msk.f32.vlgmr.msra.gmra.mrb[2].mxu1 %vm215_vm1, %v320_v47  ;;  %v1577_v58 = vpack.c.bf16 %v1645_v53, %v1644_v54  ;;  %v1591_v5 = vpack.c.bf16 %v1650_v0, %v1649_v1 }
 0x4dd   :  { %1568 = vmatpush3.bf16.msra.mxu1 %v1565_v45  ;;  %v515_v52 = vmul.f32 %v1678_v50, %v1670_v27  ;;  %v772_v2 = vpop.permute.xlu1 %771  ;;  %v1060_v8 = vpop.permute.xlu0 %1059 }
 0x4de   :  { %1570 = vmatprep.subr.bf16.mxu1 %v1569_v48 }
 0x4df   :  { %1482 = vmatprep.mubr.msk.f32.mxu1 %vm215_vm1, %v515_v52 }
 0x4e0   :  { %v1680_v55 = vpop.eup %1679 }
 0x4e1   :  { %v516_v57 = vmul.f32 %v1680_v55, %v1672_v29  ;;  %v774_v6 = vpop.permute.xlu1 %773 }
 0x4e3   :  { %1483 = vmatmul.mubr.msk.f32.vlgmr.msra.gmra.mrb[4].mxu1 %vm215_vm1, %v516_v57 }
 0x4e4   :  { %1572 = vmatpush3.bf16.msra.mxu1 %v1569_v48 }
 0x4e5   :  { %1579 = vmatprep.subr.msk.bf16.mxu1 %vm1921_vm2, %v1577_v58  ;;  %v1058_v7 = vpop.permute.xlu1 %1057 }
 0x5af   :  { %v1470_v59 = vpop.f32.mrb[2].mxu1 }
 0x5b0   :  { %v393_v60 = vpop.f32.mrb[3].mxu1 }
 0x5b1   :  { %1496 = vmatprep.mubr.msk.f32.mxu0 %vm215_vm1, %v393_v60  ;;  %v1258_v60 = vld [vmem:[#allocation7 + $0x30] sm:$0xff] }
 0x5b2   :  { %1497 = vmatmul.mubr.msk.f32.vlgmr.msra.gmra.mrb[6].mxu0 %vm215_vm1, %v1470_v59 }
 0x5b6   :  { %v1484_v3 = vpop.f32.mrb[4].mxu1 }
 0x5b7   :  { %v597_v4 = vpop.f32.mrb[5].mxu1 }
 0x5b8   :  { %1489 = vmatprep.mubr.msk.f32.mxu1 %vm215_vm1, %v597_v4 }
 0x5b9   :  { %1490 = vmatmul.mubr.msk.f32.vlgmr.msra.gmra.mrb[6].mxu1 %vm215_vm1, %v1484_v3  ;;  %v1601_v3 = vpack.c.bf16 %v1259_v63, %v1258_v60 }
 0x5ba   :  { %1582 = vmatpush3.bf16.xpose.msk.msra.mxu1 %vm1921_vm2, %v1577_v58  ;;  %1503 = vmatprep.mubr.msk.f32.mxu1 %vm215_vm1, %v772_v2 }
 0x5bb   :  { %1593 = vmatprep.subr.msk.bf16.mxu1 %vm1921_vm2, %v1591_v5 }
 0x5c1   :  { %1504 = vmatmul.mubr.msk.f32.vlgmr.msra.gmra.mrb[8].mxu1 %vm215_vm1, %v774_v6 }
 0x5c2   :  { %1596 = vmatpush3.bf16.xpose.msk.msra.mxu1 %vm1921_vm2, %v1591_v5  ;;  %1524 = vmatprep.mubr.msk.f32.mxu1 %vm215_vm1, %v1058_v7 }
 0x5c9   :  { %1525 = vmatmul.mubr.msk.f32.vlgmr.msra.gmra.mrb[10].mxu1 %vm215_vm1, %v1060_v8 }
 0x68c   :  { %v1992_v9 = vpop.f32.mrb[6].mxu1 }
 0x68d   :  { %v1994_v10 = vpop.f32.mrb[7].mxu1 }
 0x694   :  { %v1505_v11 = vpop.f32.mrb[8].mxu1 }
 0x695   :  { %v859_v12 = vadd.f32 %v1505_v11, %v1940_v61  ;;  %v853_v13 = vpop.f32.mrb[9].mxu1 }
 0x696   :  { %v854_v14 = vadd.f32 %v853_v13, %v1945_v62 }
 0x697   :  { %v865_v15 = vsel %vm215_vm1, %v859_v12, -inf }
 0x698   :  { %866 = vmax.xlane.f32.xlu0 %v865_v15  ;;  %v862_v56 = vsel %vm215_vm1, %v854_v14, -inf }
 0x699   :  { %863 = vmax.xlane.f32.xlu1 %v862_v56 }
 0x69c   :  { %v1526_v16 = vpop.f32.mrb[10].mxu1 }
 0x69d   :  { %v1139_v17 = vpop.f32.mrb[11].mxu1  ;;  %v1145_v32 = vadd.f32 %v1526_v16, %v1940_v61 }
 0x69f   :  { %v1151_v34 = vsel %vm215_vm1, %v1145_v32, -inf }
 0x6aa   :  { %1652 = vrot.lane.b32.xlu1 %v1911_v49, %s1803_s26 }
 0x6ae   :  { %1657 = vrot.lane.b32.xlu1 %v1911_v49, %s1804_s27  ;;  %v1140_v49 = vadd.f32 %v1139_v17, %v1945_v62 }
 0x6b0   :  { %v1148_v33 = vsel %vm215_vm1, %v1140_v49, -inf }
 0x725   :  { %v867_v18 = vpop.xlane.xlu0 %866 }
 0x726   :  { %v869_v19 = vsub.f32 %v859_v12, %v867_v18  ;;  %v864_v20 = vpop.xlane.xlu1 %863  ;;  %v1408_v12 = vld [vmem:[%s2047_s5] ss:$0 sm:$0xff] }
 0x727   :  { %v868_v21 = vsub.f32 %v854_v14, %v864_v20 }
 0x728   :  { %v872_v22 = vmul.f32 1.442695, %v869_v19 }
 0x729   :  { %v870_v23 = vmul.f32 1.442695, %v868_v21 }
 0x72a   :  { %v1653_v24 = vpop.permute.xlu1 %1652 }
 0x72b   :  { %1681 = vpow2.f32 %v870_v23  ;;  %v1655_v25 = vunpack.i.h.bf16 %v1653_v24  ;;  %v1654_v26 = vunpack.i.l.bf16 %v1653_v24 }
 0x72c   :  { %1683 = vpow2.f32 %v872_v22 }
 0x72d   :  { %v1583_v27 = vpack.c.bf16 %v1655_v25, %v1654_v26 }
 0x72e   :  { %v1658_v42 = vpop.permute.xlu1 %1657 }
 0x72f   :  { %1584 = vmatprep.subr.bf16.mxu0 %v1583_v27  ;;  %v1660_v46 = vunpack.i.h.bf16 %v1658_v42  ;;  %v1659_v47 = vunpack.i.l.bf16 %v1658_v42 }
 0x730   :  { %1586 = vmatpush3.bf16.msra.mxu0 %v1583_v27 }
 0x731   :  { %1588 = vmatprep.subr.bf16.mxu0 %v1587_v37  ;;  %v1597_v52 = vpack.c.bf16 %v1660_v46, %v1659_v47 }
 0x735   :  { %v1682_v28 = vpop.eup %1681 }
 0x736   :  { %v874_v29 = vsel %vm215_vm1, %v1682_v28, 0.0  ;;  %v1684_v30 = vpop.eup %1683 }
 0x737   :  { %875 = vadd.xlane.f32.xlu0 %v874_v29  ;;  %v877_v31 = vsel %vm215_vm1, %v1684_v30, 0.0 }
 0x73b   :  { %878 = vadd.xlane.f32.xlu0 %v877_v31 }
 0x73f   :  { %1149 = vmax.xlane.f32.xlu0 %v1148_v33 }
 0x743   :  { %1152 = vmax.xlane.f32.xlu0 %v1151_v34 }
 0x7c4   :  { %v876_v38 = vpop.xlane.xlu0 %875 }
 0x7c5   :  { %1685 = vrcp.f32 %v876_v38 }
 0x7c8   :  { %v879_v39 = vpop.xlane.xlu0 %878 }
 0x7c9   :  { %1687 = vrcp.f32 %v879_v39 }
 0x7cc   :  { %v1150_v62 = vpop.xlane.xlu0 %1149 }
 0x7cd   :  { %v1154_v40 = vsub.f32 %v1140_v49, %v1150_v62 }
 0x7cf   :  { %v1686_v41 = vpop.eup %1685  ;;  %v1156_v44 = vmul.f32 1.442695, %v1154_v40 }
 0x7d0   :  { %v1153_v61 = vpop.xlane.xlu0 %1152  ;;  %v882_v43 = vmul.f32 %v1686_v41, %v1682_v28 }
 0x7d1   :  { %1689 = vpow2.f32 %v1156_v44  ;;  %v1155_v45 = vsub.f32 %v1145_v32, %v1153_v61 }
 0x7d2   :  { %1510 = vmatprep.mubr.msk.f32.mxu0 %vm215_vm1, %v882_v43 }
 0x7d3   :  { %v1688_v48 = vpop.eup %1687  ;;  %v1158_v50 = vmul.f32 1.442695, %v1155_v45 }
 0x7d4   :  { %v883_v51 = vmul.f32 %v1688_v48, %v1684_v30 }
 0x7d5   :  { %1691 = vpow2.f32 %v1158_v50 }
 0x7d6   :  { %1511 = vmatmul.mubr.msk.f32.vlgmr.msra.gmra.mrb[8].mxu0 %vm215_vm1, %v883_v51 }
 0x7d7   :  { %1590 = vmatpush3.bf16.msra.mxu0 %v1587_v37 }
 0x7d8   :  { %1598 = vmatprep.subr.bf16.mxu0 %v1597_v52 }
 0x7db   :  { %v1690_v53 = vpop.eup %1689 }
 0x7dc   :  { %v1160_v54 = vsel %vm215_vm1, %v1690_v53, 0.0 }
 0x7dd   :  { %1161 = vadd.xlane.f32.xlu0 %v1160_v54 }
 0x7df   :  { %v1692_v55 = vpop.eup %1691 }
 0x7e0   :  { %v1163_v57 = vsel %vm215_vm1, %v1692_v55, 0.0 }
 0x7e1   :  { %1164 = vadd.xlane.f32.xlu0 %v1163_v57 }
 0x86a   :  { %v1162_v58 = vpop.xlane.xlu0 %1161 }
 0x86b   :  { %1693 = vrcp.f32 %v1162_v58 }
 0x86e   :  { %v1165_v59 = vpop.xlane.xlu0 %1164 }
 0x86f   :  { %1695 = vrcp.f32 %v1165_v59 }
 0x875   :  { %v1694_v0 = vpop.eup %1693 }
 0x876   :  { %v1168_v5 = vmul.f32 %v1694_v0, %v1690_v53 }
 0x879   :  { %v1696_v4 = vpop.eup %1695 }
 0x87a   :  { %v1169_v6 = vmul.f32 %v1696_v4, %v1692_v55 }
 0x8a9   :  { %v1512_v1 = vpop.f32.mrb[8].mxu0 }
 0x8aa   :  { %v962_v2 = vpop.f32.mrb[9].mxu0 }
 0x8ab   :  { %1517 = vmatprep.mubr.msk.f32.mxu0 %vm215_vm1, %v962_v2 }
 0x8ac   :  { %1518 = vmatmul.mubr.msk.f32.vlgmr.msra.gmra.mrb[6].mxu0 %vm215_vm1, %v1512_v1 }
 0x8ad   :  { %1600 = vmatpush3.bf16.msra.mxu0 %v1597_v52  ;;  %1531 = vmatprep.mubr.msk.f32.mxu0 %vm215_vm1, %v1168_v5 }
 0x8ae   :  { %1602 = vmatprep.subr.bf16.mxu0 %v1601_v3 }
 0x8b0   :  { %1532 = vmatmul.mubr.msk.f32.vlgmr.msra.gmra.mrb[10].mxu0 %vm215_vm1, %v1169_v6 }
 0x8b1   :  { %1604 = vmatpush3.bf16.msra.mxu0 %v1601_v3 }
 0x983   :  { %v1533_v7 = vpop.f32.mrb[10].mxu0 }
 0x984   :  { %v1248_v8 = vpop.f32.mrb[11].mxu0 }
 0x985   :  { %1538 = vmatprep.mubr.msk.f32.mxu0 %vm215_vm1, %v1248_v8 }
 0x986   :  { %1539 = vmatmul.mubr.msk.f32.vlgmr.msra.gmra.mrb[6].mxu0 %vm215_vm1, %v1533_v7 }
 0xa59   :  { %v1540_v11 = vpop.f32.mrb[6].mxu0 }
 0xa5a   :  { %v1605_v13 = vadd.f32 %v1540_v11, %v1992_v9  ;;  %v1332_v14 = vpop.f32.mrb[7].mxu0 }
 0xa5b   :  { %v1606_v15 = vadd.f32 %v1332_v14, %v1994_v10 }
 0xa5c   :  { %v1351_v56 = vadd.f32 %v1605_v13, %v1408_v12 }
 0xa5d   :  { %v1350_v16 = vadd.f32 %v1606_v15, %v1408_v12 }
 0xa5e   :  { %1353 = vst.msk [vmem:[#allocation8 + $0x8] sm:$0xff] %vm70_vm0, %v1351_v56 }
 0xa5f   :  { %1352 = vst.msk [vmem:[#allocation8] sm:$0xff] %vm70_vm0, %v1350_v16 }
 0xa60   :  { %1774 = shalt.err (!%p1771_p0)
}
 0xa61   :  { %s1775_s10 = scalar_lea.hbm %s2049_s7, 256 }
 0xa62   :  { %p1776_p1 = scmp.ne.s32.totalorder %s2049_s7, %s1775_s10  ;;  %p1779_p2 = scmp.lt.u32.totalorder %s1775_s10, %s2049_s7 }
 0xa64   :  { %p1781_p3 = pnand %p1779_p2, %p1776_p1 }
 0xa66   :  { %1784 = shalt.err (!%p1781_p3)
}
 0xa67   :  { %1365 = dma.vmem_to_hbm [thread:$0]  %s1360_s30, 256, %s2049_s7, [#allocation4], %s1795_s3, %s1795_s3, %s1796_s25  }
 0xa68   :  { %1789 = dma.done.wait [#allocation4], 256  }
 0xa69   :  { %1790 = vsyncadd [#allocation4], 4294967040 }
 0xa6a   :  { %1369 = vsyncpa [#allocation3], 1 }
 0xa6b   :  { %1370 = vsyncpa [#allocation6], 1 }
 0xa6c   :  { %1371 = vsyncpa [#allocation4], 1 }

</bundles_post_ra>
